<compile_context>
chip_gen: v5e
topology: v5e:2x2
jax: 0.10.0
libtpu: 0.0.40
codegen_flags: <defaults>
</compile_context>

<pallas_src>
import functools

import jax
import jax.numpy as jnp
from jax import lax
from jax.experimental import pallas as pl
from jax.experimental.pallas import tpu as pltpu


# ---------------------------------------------------------------------------
# Kernels
# ---------------------------------------------------------------------------

def _qkv_projection_kernel(x_ref, w_ref, b_ref, q_ref, k_ref, v_ref, *, d, scale):
    """Fused QKV projection for one row tile.

    x_ref: (Tm, Dp); w_ref: (Dp, 3*Dp); b_ref: (1, 3*Dp);
    q_ref/k_ref/v_ref: (Tm, Dp).  1/sqrt(D) is folded into q here.
    """
    x = x_ref[...]  # keep input dtype; MXU accumulates in f32
    qkv = jnp.dot(x, w_ref[...], preferred_element_type=jnp.float32) + b_ref[...]
    q_ref[...] = (qkv[:, :d] * scale).astype(q_ref.dtype)
    k_ref[...] = qkv[:, d:2 * d].astype(k_ref.dtype)
    v_ref[...] = qkv[:, 2 * d:].astype(v_ref.dtype)


def _flash_attention_kernel(q_ref, k_ref, v_ref, o_ref, m_sc, l_sc, acc_sc):
    """Online-softmax attention over KV tiles (grid axis 2, 'arbitrary')."""
    kv = pl.program_id(2)

    @pl.when(kv == 0)
    def _():
        m_sc[...] = jnp.full_like(m_sc, -jnp.inf)
        l_sc[...] = jnp.zeros_like(l_sc)
        acc_sc[...] = jnp.zeros_like(acc_sc)

    q = q_ref[0]  # (Tq, Dp), already scaled by 1/sqrt(D)
    k = k_ref[0]  # (Tk, Dp)
    v = v_ref[0]  # (Tk, Dp)

    # scores = q @ k^T without materializing a transpose (contract last dims).
    s = lax.dot_general(q, k,
                        dimension_numbers=(((1,), (1,)), ((), ())),
                        preferred_element_type=jnp.float32)       # (Tq, Tk) f32

    m_prev = m_sc[...]
    m_new = jnp.maximum(m_prev, jnp.max(s, axis=-1, keepdims=True))
    alpha = jnp.exp(m_prev - m_new)
    p = jnp.exp(s - m_new)
    l_sc[...] = alpha * l_sc[...] + jnp.sum(p, axis=-1, keepdims=True)
    acc_sc[...] = alpha * acc_sc[...] + jnp.dot(
        p.astype(v.dtype), v, preferred_element_type=jnp.float32)
    m_sc[...] = m_new

    @pl.when(kv == pl.num_programs(2) - 1)
    def _():
        inv_l = pl.reciprocal(l_sc[...], approx=True)   # EUP slot, ~free
        o_ref[0] = (acc_sc[...] * inv_l).astype(o_ref.dtype)


# ---------------------------------------------------------------------------
# Wrapper
# ---------------------------------------------------------------------------

def _pick_tile(n, max_tile):
    """Largest tile <= max_tile that divides n (multiple of 8), else n itself."""
    if n <= max_tile:
        return n
    for t in range(max_tile, 7, -8):
        if n % t == 0:
            return t
    return n


def self_attention(x, wq, bq, wk, bk, wv, bv):
    """x: (B, S, D). wq/wk/wv: (D, D) laid out so projection is x @ W.
    bq/bk/bv: (1, D)."""
    B, S, D = x.shape
    scale = 1.0 / (float(D) ** 0.5)

    # ---- lane-dense padding of the feature dim (exact for this op:
    # zero-padded features contribute 0 to q.k and produce 0 output columns).
    Dp = ((D + 127) // 128) * 128
    if Dp != D:
        pad = Dp - D
        x = jnp.pad(x, ((0, 0), (0, 0), (0, pad)))
        wq = jnp.pad(wq, ((0, pad), (0, pad)))
        wk = jnp.pad(wk, ((0, pad), (0, pad)))
        wv = jnp.pad(wv, ((0, pad), (0, pad)))
        bq = jnp.pad(bq, ((0, 0), (0, pad)))
        bk = jnp.pad(bk, ((0, 0), (0, pad)))
        bv = jnp.pad(bv, ((0, 0), (0, pad)))

    # ---- fuse QKV into one weight / bias.
    w_qkv = jnp.concatenate([wq, wk, wv], axis=1)   # (Dp, 3*Dp)
    b_qkv = jnp.concatenate([bq, bk, bv], axis=1)   # (1, 3*Dp)

    # ---- stage 1: fused QKV projection over row tiles of (B*S, Dp).
    rows = B * S
    tm = _pick_tile(rows, 512)
    x2 = x.reshape(rows, Dp)

    q, k, v = pl.pallas_call(
        functools.partial(_qkv_projection_kernel, d=Dp, scale=scale),
        out_shape=(jax.ShapeDtypeStruct((rows, Dp), x.dtype),) * 3,
        grid_spec=pltpu.PrefetchScalarGridSpec(
            num_scalar_prefetch=0,
            grid=(rows // tm,),
            in_specs=[
                pl.BlockSpec((tm, Dp), lambda i: (i, 0)),        # x rows
                pl.BlockSpec((Dp, 3 * Dp), lambda i: (0, 0)),    # fused W
                pl.BlockSpec((1, 3 * Dp), lambda i: (0, 0)),     # fused b
            ],
            out_specs=[pl.BlockSpec((tm, Dp), lambda i: (i, 0))] * 3,
        ),
        compiler_params=pltpu.CompilerParams(
            dimension_semantics=("parallel",)),
    )(x2, w_qkv, b_qkv)

    q = q.reshape(B, S, Dp)
    k = k.reshape(B, S, Dp)
    v = v.reshape(B, S, Dp)

    # ---- stage 2: flash-style attention, tiled over query and KV sequence.
    tq = _pick_tile(S, 256)
    tk = _pick_tile(S, 256)

    out = pl.pallas_call(
        _flash_attention_kernel,
        out_shape=jax.ShapeDtypeStruct((B, S, Dp), x.dtype),
        grid_spec=pltpu.PrefetchScalarGridSpec(
            num_scalar_prefetch=0,
            grid=(B, S // tq, S // tk),
            in_specs=[
                pl.BlockSpec((1, tq, Dp), lambda b, qi, ki: (b, qi, 0)),  # q
                pl.BlockSpec((1, tk, Dp), lambda b, qi, ki: (b, ki, 0)),  # k
                pl.BlockSpec((1, tk, Dp), lambda b, qi, ki: (b, ki, 0)),  # v
            ],
            out_specs=pl.BlockSpec((1, tq, Dp), lambda b, qi, ki: (b, qi, 0)),
            scratch_shapes=[
                pltpu.VMEM((tq, 1), jnp.float32),    # running max m
                pltpu.VMEM((tq, 1), jnp.float32),    # running sum l
                pltpu.VMEM((tq, Dp), jnp.float32),   # output accumulator
            ],
        ),
        compiler_params=pltpu.CompilerParams(
            dimension_semantics=("parallel", "parallel", "arbitrary")),
    )(q, k, v)

    if Dp != D:
        out = out[:, :, :D]
    return out


# ---------------------------------------------------------------------------
# Reference & test
# ---------------------------------------------------------------------------

def reference_self_attention(x, wq, bq, wk, bk, wv, bv):
    """Plain-JAX reference mirroring the PyTorch forward."""
    q = x @ wq + bq
    k = x @ wk + bk
    v = x @ wv + bv
    scores = jnp.einsum("bsd,btd->bst", q, k) / (x.shape[-1] ** 0.5)
    w = jax.nn.softmax(scores, axis=-1)
    return jnp.einsum("bst,btd->bsd", w, v)


if __name__ == "__main__":
    B, S, D = 2, 8, 32

    key = jax.random.PRNGKey(0)
    kx, kq, kbq, kk, kbk, kv_, kbv = jax.random.split(key, 7)

    # Deterministic init matching nn.Linear's uniform(-1/sqrt(D), 1/sqrt(D)) scale.
    bound = 1.0 / (D ** 0.5)
    x = jax.random.normal(kx, (B, S, D), dtype=jnp.float32)
    # Weights stored as (in, out) so the kernel computes x @ W (== torch's x @ W_t.T).
    wq = jax.random.uniform(kq, (D, D), jnp.float32, -bound, bound)
    bq = jax.random.uniform(kbq, (1, D), jnp.float32, -bound, bound)
    wk = jax.random.uniform(kk, (D, D), jnp.float32, -bound, bound)
    bk = jax.random.uniform(kbk, (1, D), jnp.float32, -bound, bound)
    wv = jax.random.uniform(kv_, (D, D), jnp.float32, -bound, bound)
    bv = jax.random.uniform(kbv, (1, D), jnp.float32, -bound, bound)

    out = self_attention(x, wq, bq, wk, bk, wv, bv)
    out = jax.block_until_ready(out)

    ref = reference_self_attention(x, wq, bq, wk, bk, wv, bv)
    assert out.shape == (B, S, D)
    # Tolerance relaxed slightly for pl.reciprocal(approx=True); accumulation
    # and softmax are f32, so error stays well below this.
    assert jnp.allclose(out, ref, atol=5e-3, rtol=5e-3), "mismatch vs reference"

    print("KERNEL_OK")
</pallas_src>

<mosaic_0001>
module attributes {stable_mosaic.version = 11 : i64} {
  func.func @_qkv_projection_kernel(%arg0: i32, %arg1: memref<16x128xf32, #tpu.memory_space<vmem>>, %arg2: memref<128x384xf32, #tpu.memory_space<vmem>>, %arg3: memref<1x384xf32, #tpu.memory_space<vmem>>, %arg4: memref<16x128xf32, #tpu.memory_space<vmem>>, %arg5: memref<16x128xf32, #tpu.memory_space<vmem>>, %arg6: memref<16x128xf32, #tpu.memory_space<vmem>>) attributes {dimension_semantics = [#tpu.dimension_semantics<parallel>], iteration_bounds = array<i64: 1>, scalar_prefetch = 0 : i64, scratch_operands = 0 : i64, tpu.core_type = #tpu.core_type<tc>, window_params = [{transform_indices = @transform_0, window_bounds = array<i64: 16, 128>}, {pipeline_mode = #tpu.pipeline_mode<synchronous>, transform_indices = @transform_1, window_bounds = array<i64: 128, 384>}, {pipeline_mode = #tpu.pipeline_mode<synchronous>, transform_indices = @transform_2, window_bounds = array<i64: 1, 384>}, {transform_indices = @transform_3, window_bounds = array<i64: 16, 128>}, {transform_indices = @transform_4, window_bounds = array<i64: 16, 128>}, {transform_indices = @transform_5, window_bounds = array<i64: 16, 128>}]} {
    %c0 = arith.constant 0 : index
    %c0_0 = arith.constant 0 : index
    %0 = vector.load %arg1[%c0, %c0_0] : memref<16x128xf32, #tpu.memory_space<vmem>>, vector<16x128xf32>
    %c0_1 = arith.constant 0 : index
    %c0_2 = arith.constant 0 : index
    %1 = vector.load %arg2[%c0_1, %c0_2] : memref<128x384xf32, #tpu.memory_space<vmem>>, vector<128x384xf32>
    %cst = arith.constant dense<0.000000e+00> : vector<16x384xf32>
    %2 = tpu.matmul %0, %1, %cst {dimension_numbers = #tpu.dot_dimension_numbers<[1], [0], [0], [1], [0, 0, 1, 1], [], []>} : vector<16x128xf32>, vector<128x384xf32>, vector<16x384xf32> -> vector<16x384xf32>
    %c0_3 = arith.constant 0 : index
    %c0_4 = arith.constant 0 : index
    %3 = vector.load %arg3[%c0_3, %c0_4] : memref<1x384xf32, #tpu.memory_space<vmem>>, vector<1x384xf32>
    %4 = vector.broadcast %3 : vector<1x384xf32> to vector<16x384xf32>
    %5 = arith.addf %2, %4 : vector<16x384xf32>
    %6 = vector.extract_strided_slice %5 {offsets = [0, 0], sizes = [16, 128], strides = [1, 1]} : vector<16x384xf32> to vector<16x128xf32>
    %cst_5 = arith.constant 0.176776692 : f32
    %7 = vector.broadcast %cst_5 : f32 to vector<16x128xf32>
    %8 = arith.mulf %6, %7 : vector<16x128xf32>
    %c0_6 = arith.constant 0 : index
    %c0_7 = arith.constant 0 : index
    %9 = vector.load %arg4[%c0_6, %c0_7] : memref<16x128xf32, #tpu.memory_space<vmem>>, vector<16x128xf32>
    tpu.vector_store %arg4[%c0_6, %c0_7], %8 {strides = array<i32>} : memref<16x128xf32, #tpu.memory_space<vmem>>, vector<16x128xf32>,
    %10 = vector.extract_strided_slice %5 {offsets = [0, 128], sizes = [16, 128], strides = [1, 1]} : vector<16x384xf32> to vector<16x128xf32>
    %c0_8 = arith.constant 0 : index
    %c0_9 = arith.constant 0 : index
    %11 = vector.load %arg5[%c0_8, %c0_9] : memref<16x128xf32, #tpu.memory_space<vmem>>, vector<16x128xf32>
    tpu.vector_store %arg5[%c0_8, %c0_9], %10 {strides = array<i32>} : memref<16x128xf32, #tpu.memory_space<vmem>>, vector<16x128xf32>,
    %12 = vector.extract_strided_slice %5 {offsets = [0, 256], sizes = [16, 128], strides = [1, 1]} : vector<16x384xf32> to vector<16x128xf32>
    %c0_10 = arith.constant 0 : index
    %c0_11 = arith.constant 0 : index
    %13 = vector.load %arg6[%c0_10, %c0_11] : memref<16x128xf32, #tpu.memory_space<vmem>>, vector<16x128xf32>
    tpu.vector_store %arg6[%c0_10, %c0_11], %12 {strides = array<i32>} : memref<16x128xf32, #tpu.memory_space<vmem>>, vector<16x128xf32>,
    return
  }
  func.func @transform_0(%arg0: i32) -> (i32, i32) {
    %c0_i32 = arith.constant 0 : i32
    %c0_i32_0 = arith.constant 0 : i32
    return %arg0, %c0_i32 : i32, i32
  }
  func.func @transform_1(%arg0: i32) -> (i32, i32) {
    %c0_i32 = arith.constant 0 : i32
    %c0_i32_0 = arith.constant 0 : i32
    %c0_i32_1 = arith.constant 0 : i32
    return %c0_i32, %c0_i32_0 : i32, i32
  }
  func.func @transform_2(%arg0: i32) -> (i32, i32) {
    %c0_i32 = arith.constant 0 : i32
    %c0_i32_0 = arith.constant 0 : i32
    %c0_i32_1 = arith.constant 0 : i32
    return %c0_i32, %c0_i32_0 : i32, i32
  }
  func.func @transform_3(%arg0: i32) -> (i32, i32) {
    %c0_i32 = arith.constant 0 : i32
    %c0_i32_0 = arith.constant 0 : i32
    return %arg0, %c0_i32 : i32, i32
  }
  func.func @transform_4(%arg0: i32) -> (i32, i32) {
    %c0_i32 = arith.constant 0 : i32
    %c0_i32_0 = arith.constant 0 : i32
    return %arg0, %c0_i32 : i32, i32
  }
  func.func @transform_5(%arg0: i32) -> (i32, i32) {
    %c0_i32 = arith.constant 0 : i32
    %c0_i32_0 = arith.constant 0 : i32
    return %arg0, %c0_i32 : i32, i32
  }
}

</mosaic_0001>

<bundles_post_ra>
// kernel: tpu_custom_call.1
= control target key start
LH: loop header
LB: loop body
LE: loop exit
PB: predicated region body
PF: predicated region fallthrough
CT: control target
= control target key end

     0   :  { %11 = vsyncpa [#allocation3], 0  ;;  %s502_s0 = inlined_call_operand.hbm [shape: f32[16,128], index: 0, kind: input, shape index: {}]   ;;  %s503_s1 = inlined_call_operand.hbm [shape: f32[128,384], index: 1, kind: input, shape index: {}]   ;;  %s504_s2 = inlined_call_operand.hbm [shape: f32[1,384], index: 2, kind: input, shape index: {}]   ;;  %s505_s3 = inlined_call_operand.hbm [shape: f32[16,128], index: 3, kind: output, shape index: {0}]   ;;  %s506_s4 = inlined_call_operand.hbm [shape: f32[16,128], index: 4, kind: output, shape index: {1}]   ;;  %s507_s5 = inlined_call_operand.hbm [shape: f32[16,128], index: 5, kind: output, shape index: {2}]  }
   0x1   :  { %12 = vsyncpa [#allocation6], 0 }
   0x2   :  { %13 = vsyncpa [#allocation4], 0  ;;  %s32_s20 = sshll.u32 %s503_s1, 4  ;;  %s33_s20 = int_to_ptr.hbm [resolvable:$true] %s32_s20 }
   0x3   :  { %14 = vsyncpa [#allocation10], 0  ;;  %s432_s21 = smov [#allocation5]   ;;  %s19_s25 = sshll.u32 %s502_s0, 4  ;;  %s20_s25 = int_to_ptr.hbm [resolvable:$true] %s19_s25 }
   0x4   :  { %s34_s22 = sshll.u32 %s432_s21, 4  ;;  %s433_s26 = smov 384   ;;  %s35_s22 = int_to_ptr.vmem [resolvable:$true] %s34_s22 }
   0x5   :  { %s434_s27 = smov 24   ;;  %s435_s28 = smov [#allocation2]  }
   0x6   :  { %40 = dma.hbm_to_vmem [thread:$0]  %s33_s20, 6144, %s35_s22, [#allocation6], %s433_s26, %s433_s26, %s434_s27  }
   0x7   :  { %s21_s29 = sshll.u32 %s435_s28, 4  ;;  %s436_s30 = smov 128   ;;  %s22_s29 = int_to_ptr.vmem [resolvable:$true] %s21_s29 }
   0x8   :  { %s437_s6 = smov 8   ;;  %s46_s8 = sshll.u32 %s504_s2, 4  ;;  %s47_s8 = int_to_ptr.hbm [resolvable:$true] %s46_s8 }
   0x9   :  { %27 = dma.hbm_to_vmem [thread:$0]  %s20_s25, 256, %s22_s29, [#allocation3], %s436_s30, %s436_s30, %s437_s6  }
   0xa   :  { %s438_s9 = smov [#allocation7]  }
   0xb   :  { %s48_s0 = sshll.u32 %s438_s9, 4  ;;  %s49_s0 = int_to_ptr.vmem [resolvable:$true] %s48_s0 }
   0xc   :  { %51 = dma.hbm_to_vmem [thread:$0]  %s47_s8, 48, %s49_s0, [#allocation6]  }
   0xd   :  { %424 = dma.done.wait [#allocation3], 256  }
   0xe   :  { %425 = vsyncadd [#allocation3], 4294967040 }
   0xf   :  { %426 = dma.done.wait [#allocation6], 6192  }
  0x10   :  { %427 = vsyncadd [#allocation6], 4294961104  ;;  %v113_v0 = vld [vmem:[#allocation5 + $0x178] sm:$0xff]  ;;  %v110_v1 = vld [vmem:[#allocation5 + $0x160] sm:$0xff]  ;;  %s439_s2 = smov [#allocation9]   ;;  %s218_s13 = sshll.u32 %s506_s4, 4  ;;  %s219_s13 = int_to_ptr.hbm [resolvable:$true] %s218_s13 }
  0x11   :  { %168 = vmatpush.msra.mxu2 %v113_v0  ;;  %v112_v2 = vld [vmem:[#allocation5 + $0x170] sm:$0xff]  ;;  %v111_v3 = vld [vmem:[#allocation5 + $0x168] sm:$0xff]  ;;  %v109_v5 = vld [vmem:[#allocation5 + $0x158] sm:$0xff]  ;;  %s216_s10 = sshll.u32 %s439_s2, 4  ;;  %s440_s14 = smov [#allocation8]   ;;  %s217_s10 = int_to_ptr.vmem [resolvable:$true] %s216_s10 }
  0x12   :  { %v107_v4 = vld [vmem:[#allocation5 + $0x148] sm:$0xff]  ;;  %145 = vmatpush.msra.mxu1 %v112_v2  ;;  %254 = vmatpush.msra.mxu3 %v111_v3  ;;  %v108_v6 = vld [vmem:[#allocation5 + $0x150] sm:$0xff]  ;;  %v106_v7 = vld [vmem:[#allocation5 + $0x140] sm:$0xff]  ;;  %s203_s15 = sshll.u32 %s440_s14, 4  ;;  %s205_s18 = sshll.u32 %s505_s3, 4  ;;  %s204_s15 = int_to_ptr.vmem [resolvable:$true] %s203_s15  ;;  %s206_s18 = int_to_ptr.hbm [resolvable:$true] %s205_s18 }
  0x13   :  { %169 = vmatpush.msra.mxu2 %v110_v1  ;;  %v105_v8 = vld [vmem:[#allocation5 + $0x138] sm:$0xff]  ;;  %122 = vmatpush.msra.mxu0 %v111_v3  ;;  %v104_v9 = vld [vmem:[#allocation5 + $0x130] sm:$0xff]  ;;  %v103_v10 = vld [vmem:[#allocation5 + $0x128] sm:$0xff]  ;;  %s441_s19 = smov [#allocation11]   ;;  %s231_s22 = sshll.u32 %s507_s5, 4  ;;  %s232_s22 = int_to_ptr.hbm [resolvable:$true] %s231_s22 }
  0x14   :  { %146 = vmatpush.msra.mxu1 %v109_v5  ;;  %255 = vmatpush.msra.mxu3 %v108_v6  ;;  %v102_v11 = vld [vmem:[#allocation5 + $0x120] sm:$0xff]  ;;  %v101_v12 = vld [vmem:[#allocation5 + $0x118] sm:$0xff]  ;;  %v100_v13 = vld [vmem:[#allocation5 + $0x110] sm:$0xff]  ;;  %s229_s4 = sshll.u32 %s441_s19, 4  ;;  %s230_s4 = int_to_ptr.vmem [resolvable:$true] %s229_s4 }
  0x15   :  { %170 = vmatpush.msra.mxu2 %v107_v4  ;;  %123 = vmatpush.msra.mxu0 %v108_v6  ;;  %v99_v14 = vld [vmem:[#allocation5 + $0x108] sm:$0xff]  ;;  %v98_v15 = vld [vmem:[#allocation5 + $0x100] sm:$0xff]  ;;  %v97_v16 = vld [vmem:[#allocation5 + $0xf8] sm:$0xff] }
  0x16   :  { %147 = vmatpush.msra.mxu1 %v106_v7  ;;  %256 = vmatpush.msra.mxu3 %v105_v8  ;;  %v96_v17 = vld [vmem:[#allocation5 + $0xf0] sm:$0xff]  ;;  %v95_v18 = vld [vmem:[#allocation5 + $0xe8] sm:$0xff]  ;;  %v94_v19 = vld [vmem:[#allocation5 + $0xe0] sm:$0xff] }
  0x17   :  { %171 = vmatpush.msra.mxu2 %v104_v9  ;;  %124 = vmatpush.msra.mxu0 %v105_v8  ;;  %v93_v20 = vld [vmem:[#allocation5 + $0xd8] sm:$0xff]  ;;  %v92_v21 = vld [vmem:[#allocation5 + $0xd0] sm:$0xff]  ;;  %v91_v22 = vld [vmem:[#allocation5 + $0xc8] sm:$0xff] }
  0x18   :  { %148 = vmatpush.msra.mxu1 %v103_v10  ;;  %257 = vmatpush.msra.mxu3 %v102_v11  ;;  %v90_v23 = vld [vmem:[#allocation5 + $0xc0] sm:$0xff]  ;;  %v89_v24 = vld [vmem:[#allocation5 + $0xb8] sm:$0xff]  ;;  %v88_v25 = vld [vmem:[#allocation5 + $0xb0] sm:$0xff] }
  0x19   :  { %172 = vmatpush.msra.mxu2 %v101_v12  ;;  %125 = vmatpush.msra.mxu0 %v102_v11  ;;  %v87_v26 = vld [vmem:[#allocation5 + $0xa8] sm:$0xff]  ;;  %v86_v27 = vld [vmem:[#allocation5 + $0xa0] sm:$0xff]  ;;  %v85_v28 = vld [vmem:[#allocation5 + $0x98] sm:$0xff] }
  0x1a   :  { %149 = vmatpush.msra.mxu1 %v100_v13  ;;  %258 = vmatpush.msra.mxu3 %v99_v14  ;;  %v84_v29 = vld [vmem:[#allocation5 + $0x90] sm:$0xff]  ;;  %v83_v30 = vld [vmem:[#allocation5 + $0x88] sm:$0xff]  ;;  %v82_v31 = vld [vmem:[#allocation5 + $0x80] sm:$0xff] }
  0x1b   :  { %173 = vmatpush.msra.mxu2 %v98_v15  ;;  %126 = vmatpush.msra.mxu0 %v99_v14  ;;  %v81_v32 = vld [vmem:[#allocation5 + $0x78] sm:$0xff]  ;;  %v80_v33 = vld [vmem:[#allocation5 + $0x70] sm:$0xff]  ;;  %v79_v34 = vld [vmem:[#allocation5 + $0x68] sm:$0xff] }
  0x1c   :  { %150 = vmatpush.msra.mxu1 %v97_v16  ;;  %259 = vmatpush.msra.mxu3 %v96_v17  ;;  %v78_v35 = vld [vmem:[#allocation5 + $0x60] sm:$0xff]  ;;  %v77_v36 = vld [vmem:[#allocation5 + $0x58] sm:$0xff]  ;;  %v76_v37 = vld [vmem:[#allocation5 + $0x50] sm:$0xff] }
  0x1d   :  { %174 = vmatpush.msra.mxu2 %v95_v18  ;;  %127 = vmatpush.msra.mxu0 %v96_v17  ;;  %v75_v38 = vld [vmem:[#allocation5 + $0x48] sm:$0xff]  ;;  %v74_v39 = vld [vmem:[#allocation5 + $0x40] sm:$0xff]  ;;  %v73_v40 = vld [vmem:[#allocation5 + $0x38] sm:$0xff] }
  0x1e   :  { %151 = vmatpush.msra.mxu1 %v94_v19  ;;  %260 = vmatpush.msra.mxu3 %v93_v20  ;;  %v72_v41 = vld [vmem:[#allocation5 + $0x30] sm:$0xff]  ;;  %v71_v42 = vld [vmem:[#allocation5 + $0x28] sm:$0xff]  ;;  %v70_v43 = vld [vmem:[#allocation5 + $0x20] sm:$0xff] }
  0x1f   :  { %175 = vmatpush.msra.mxu2 %v92_v21  ;;  %128 = vmatpush.msra.mxu0 %v93_v20  ;;  %v69_v44 = vld [vmem:[#allocation5 + $0x18] sm:$0xff]  ;;  %v68_v45 = vld [vmem:[#allocation5 + $0x10] sm:$0xff]  ;;  %v67_v47 = vld [vmem:[#allocation5 + $0x8] sm:$0xff] }
  0x20   :  { %152 = vmatpush.msra.mxu1 %v91_v22  ;;  %261 = vmatpush.msra.mxu3 %v90_v23  ;;  %v64_v46 = vld [vmem:[#allocation2] sm:$0xff]  ;;  %v66_v48 = vld [vmem:[#allocation5] sm:$0xff]  ;;  %v65_v49 = vld [vmem:[#allocation2 + $0x8] sm:$0xff] }
  0x21   :  { %176 = vmatpush.msra.mxu2 %v89_v24  ;;  %129 = vmatpush.msra.mxu0 %v90_v23  ;;  %v114_v50 = vld [vmem:[#allocation7] sm:$0x7] }
  0x22   :  { %153 = vmatpush.msra.mxu1 %v88_v25  ;;  %262 = vmatpush.msra.mxu3 %v87_v26  ;;  %v117_v51 = vperm.slane %v114_v50, 1  ;;  %v116_v52 = vperm.slane %v114_v50, 0  ;;  %v118_v55 = vperm.slane %v114_v50, 2 }
  0x23   :  { %177 = vmatpush.msra.mxu2 %v86_v27  ;;  %130 = vmatpush.msra.mxu0 %v87_v26 }
  0x24   :  { %154 = vmatpush.msra.mxu1 %v85_v28  ;;  %263 = vmatpush.msra.mxu3 %v84_v29 }
  0x25   :  { %178 = vmatpush.msra.mxu2 %v83_v30  ;;  %131 = vmatpush.msra.mxu0 %v84_v29 }
  0x26   :  { %155 = vmatpush.msra.mxu1 %v82_v31  ;;  %264 = vmatpush.msra.mxu3 %v81_v32 }
  0x27   :  { %179 = vmatpush.msra.mxu2 %v80_v33  ;;  %132 = vmatpush.msra.mxu0 %v81_v32 }
  0x28   :  { %156 = vmatpush.msra.mxu1 %v79_v34  ;;  %265 = vmatpush.msra.mxu3 %v78_v35 }
  0x29   :  { %180 = vmatpush.msra.mxu2 %v77_v36  ;;  %133 = vmatpush.msra.mxu0 %v78_v35 }
  0x2a   :  { %157 = vmatpush.msra.mxu1 %v76_v37  ;;  %266 = vmatpush.msra.mxu3 %v75_v38 }
  0x2b   :  { %181 = vmatpush.msra.mxu2 %v74_v39  ;;  %134 = vmatpush.msra.mxu0 %v75_v38 }
  0x2c   :  { %158 = vmatpush.msra.mxu1 %v73_v40  ;;  %267 = vmatpush.msra.mxu3 %v72_v41 }
  0x2d   :  { %182 = vmatpush.msra.mxu2 %v71_v42  ;;  %135 = vmatpush.msra.mxu0 %v72_v41 }
  0x2e   :  { %159 = vmatpush.msra.mxu1 %v70_v43  ;;  %268 = vmatpush.msra.mxu3 %v69_v44 }
  0x2f   :  { %183 = vmatpush.msra.mxu2 %v68_v45  ;;  %136 = vmatpush.msra.mxu0 %v69_v44 }
  0x30   :  { %184 = vmatmul.f32.vlgmr.msra.gmra.mxu2 %v64_v46  ;;  %160 = vmatpush.msra.mxu1 %v67_v47 }
  0x31   :  { %269 = vmatpush.msra.mxu3 %v66_v48  ;;  %161 = vmatmul.f32.vlgmr.msra.gmra.mxu1 %v64_v46 }
  0x32   :  { %141 = vmatmul.f32.vlgmr.msra.gmra.mxu3 %v65_v49  ;;  %137 = vmatpush.msra.mxu0 %v66_v48 }
  0x33   :  { %138 = vmatmul.f32.vlgmr.msra.gmra.mxu0 %v64_v46 }
  0x38   :  { %187 = vmatmul.f32.gmra.mxu2 %v65_v49 }
  0x39   :  { %164 = vmatmul.f32.gmra.mxu1 %v65_v49 }
  0xae   :  { %v162_v53 = vpop.f32.mrf.mxu1 }
  0xaf   :  { %v163_v54 = vadd.f32 %v162_v53, %v117_v51 }
  0xb0   :  { %v139_v56 = vpop.f32.mrf.mxu0 }
  0xb1   :  { %195 = vst [vmem:[#allocation9] sm:$0xff] %v163_v54  ;;  %v140_v57 = vadd.f32 %v139_v56, %v116_v52 }
  0xb3   :  { %v185_v58 = vpop.f32.mrf.mxu2  ;;  %v191_v59 = vmul.f32 0.17677669, %v140_v57 }
  0xb4   :  { %v186_v60 = vadd.f32 %v185_v58, %v118_v55 }
  0xb5   :  { %193 = vst [vmem:[#allocation8] sm:$0xff] %v191_v59  ;;  %v142_v61 = vpop.f32.mrf.mxu3 }
  0xb6   :  { %197 = vst [vmem:[#allocation11] sm:$0xff] %v186_v60  ;;  %v143_v62 = vadd.f32 %v142_v61, %v116_v52  ;;  %v165_v63 = vpop.f32.mrf.mxu1 }
  0xb7   :  { %v166_v0 = vadd.f32 %v165_v63, %v117_v51 }
  0xb8   :  { %v192_v1 = vmul.f32 0.17677669, %v143_v62 }
  0xb9   :  { %196 = vst [vmem:[#allocation9 + $0x8] sm:$0xff] %v166_v0 }
  0xba   :  { %194 = vst [vmem:[#allocation8 + $0x8] sm:$0xff] %v192_v1  ;;  %224 = dma.vmem_to_hbm [thread:$0]  %s217_s10, 256, %s219_s13, [#allocation10], %s436_s30, %s436_s30, %s437_s6  }
  0xbb   :  { %v188_v2 = vpop.f32.mrf.mxu2  ;;  %211 = dma.vmem_to_hbm [thread:$0]  %s204_s15, 256, %s206_s18, [#allocation4], %s436_s30, %s436_s30, %s437_s6  }
  0xbc   :  { %v189_v3 = vadd.f32 %v188_v2, %v118_v55 }
  0xbe   :  { %198 = vst [vmem:[#allocation11 + $0x8] sm:$0xff] %v189_v3 }
  0xbf   :  { %237 = dma.vmem_to_hbm [thread:$0]  %s230_s4, 256, %s232_s22, [#allocation10], %s436_s30, %s436_s30, %s437_s6  }
  0xc0   :  { %428 = dma.done.wait [#allocation4], 256  }
  0xc1   :  { %429 = vsyncadd [#allocation4], 4294967040 }
  0xc2   :  { %430 = dma.done.wait [#allocation10], 512  }
  0xc3   :  { %431 = vsyncadd [#allocation10], 4294966784 }
  0xc4   :  { %250 = vsyncpa [#allocation3], 1 }
  0xc5   :  { %251 = vsyncpa [#allocation6], 1 }
  0xc6   :  { %252 = vsyncpa [#allocation4], 1 }
  0xc7   :  { %253 = vsyncpa [#allocation10], 1 }

</bundles_post_ra>
